<compile_context>
chip_gen: v7x
topology: tpu7x:2x2x1
jax: 0.10.0
libtpu: 0.0.40
codegen_flags: <defaults>
</compile_context>

<pallas_src>
import jax
import jax.numpy as jnp
from jax.experimental import pallas as pl
from jax.experimental.pallas import tpu as pltpu

HIDDEN_SIZE = 64


def _critic_kernel(x_ref, w1_ref, b1_ref, w2_ref, b2_ref, w3_ref, b3_ref, o_ref):
    # x_ref : (F, TB)  feature-major batch tile (batch on the lane axis)
    # w1_ref: (H, F)   b1_ref: (H, 1)
    # w2_ref: (H, H)   b2_ref: (H, 1)
    # w3_ref: (H, 1)   b3_ref: (1, 1) scalar in SMEM
    # o_ref : (1, TB)  lane-dense output slab
    x = x_ref[...]
    w1 = w1_ref[...]
    F = x.shape[0]

    # Layer 1: K = F (= 4) is tiny, so use F broadcast-FMAs on the VPU instead
    # of a <2%-utilized MXU pass; overlaps with the layer-2 matmul.
    h1 = b1_ref[...]                                   # (H, 1), broadcasts over lanes
    for f in range(F):                                 # static, unrolled at trace time
        h1 = h1 + w1[:, f:f + 1] * x[f:f + 1, :]       # (H,1)*(1,TB) -> (H,TB)
    h1 = jnp.maximum(h1, 0.0)

    # Layer 2: the only real matmul (H x H) -> MXU, f32 accumulation.
    h2 = jnp.dot(w2_ref[...], h1, preferred_element_type=jnp.float32) + b2_ref[...]
    h2 = jnp.maximum(h2, 0.0)                          # (H, TB)

    # Layer 3 (64 -> 1): VPU multiply + sublane reduction; output stays
    # lane-dense -> unmasked full-lane stores.
    y = jnp.sum(h2 * w3_ref[...], axis=0, keepdims=True) + b3_ref[0, 0]
    o_ref[...] = y.astype(o_ref.dtype)


def _round_up(x, m):
    return ((x + m - 1) // m) * m


def _choose_tiling(B, block_b):
    """Pick (tile_rows, grid) for the batch axis.

    * tiny batches (<= 256): single full-extent tile (latency path).
    * otherwise: >= 2 grid steps (overlap DMA/writeback with compute) with an
      EVEN grid count so v7x's two TensorCores get balanced work, and tile
      sizes that are multiples of 128 (lane-dense blocks; ragged tail is
      masked by Pallas).
    """
    if B <= 256:
        return B, 1
    grid_b = max(2, pl.cdiv(B, block_b))
    if grid_b % 2:
        grid_b += 1
    tb = _round_up(pl.cdiv(B, grid_b), 128)
    grid_b = pl.cdiv(B, tb)
    return tb, grid_b


def ddpg_critic_forward(x, params, *, block_b=4096, x_feature_major=False):
    """Forward pass.

    x: (B, state_n + action_n) float32 (or (F, B) if x_feature_major=True).
    params: PyTorch-layout (w1 (H,F), b1 (H,), w2 (H,H), b2 (H,), w3 (1,H), b3 (1,)).
    Returns (B, 1) float32.
    """
    w1, b1, w2, b2, w3, b3 = params
    H = HIDDEN_SIZE

    if x_feature_major:
        F, B = x.shape
        xT = x
    else:
        B, F = x.shape
        xT = x.T  # (F, B): tiny relayout of a (B, 4) array

    b1c = b1.reshape(H, 1)
    b2c = b2.reshape(H, 1)
    w3c = w3.reshape(H, 1)
    b3s = b3.reshape(1, 1)

    tb, grid_b = _choose_tiling(B, block_b)

    # Advisory cost estimate (real HBM traffic only: x in, y out, weights once).
    flops = 2 * B * (F * H + H * H + H)
    bytes_accessed = 4 * (B * F + B + F * H + H + H * H + H + H + 1)
    cost = pl.CostEstimate(flops=flops, transcendentals=0,
                           bytes_accessed=bytes_accessed)

    out = pl.pallas_call(
        _critic_kernel,
        out_shape=jax.ShapeDtypeStruct((1, B), jnp.float32),
        grid=(grid_b,),
        in_specs=[
            pl.BlockSpec((F, tb), lambda i: (0, i)),             # x: streamed tile
            pl.BlockSpec((H, F), lambda i: (0, 0)),              # w1 (VMEM-resident)
            pl.BlockSpec((H, 1), lambda i: (0, 0)),              # b1
            pl.BlockSpec((H, H), lambda i: (0, 0)),              # w2
            pl.BlockSpec((H, 1), lambda i: (0, 0)),              # b2
            pl.BlockSpec((H, 1), lambda i: (0, 0)),              # w3
            pl.BlockSpec(memory_space=pltpu.MemorySpace.SMEM),   # b3 scalar
        ],
        out_specs=pl.BlockSpec((1, tb), lambda i: (0, i)),       # lane-dense slab
        compiler_params=pltpu.CompilerParams(
            dimension_semantics=("parallel",),      # v7x: shard batch over 2 TCs
            vmem_limit_bytes=32 * 1024 * 1024,      # explicit headroom for big tiles
        ),
        cost_estimate=cost,
    )(xT, w1, b1c, w2, b2c, w3c, b3s)

    # (1, B) -> (B, 1): same linearization, free reshape (no slice, no pad).
    return out.reshape(B, 1)


def init_params(key, state_n, action_n):
    """Deterministic init mimicking torch.nn.Linear defaults, PyTorch layouts."""
    in_dim = state_n + action_n
    dims = [(in_dim, HIDDEN_SIZE), (HIDDEN_SIZE, HIDDEN_SIZE), (HIDDEN_SIZE, 1)]
    params = []
    for fan_in, fan_out in dims:
        key, kw, kb = jax.random.split(key, 3)
        bound = 1.0 / (fan_in ** 0.5)
        w = jax.random.uniform(kw, (fan_out, fan_in), jnp.float32, -bound, bound)
        b = jax.random.uniform(kb, (fan_out,), jnp.float32, -bound, bound)
        params.extend([w, b])
    return tuple(params)


def _reference(x, params):
    w1, b1, w2, b2, w3, b3 = params
    h1 = jnp.maximum(x @ w1.T + b1, 0.0)
    h2 = jnp.maximum(h1 @ w2.T + b2, 0.0)
    return h2 @ w3.T + b3


if __name__ == "__main__":
    # Pendulum-v1: state_n=3, action_n=1; forward input is concat([state, action]).
    state_n, action_n = 3, 1
    in_dim = state_n + action_n

    key = jax.random.PRNGKey(0)
    kp, kx1, kx2, kx3 = jax.random.split(key, 4)
    params = init_params(kp, state_n, action_n)

    # 1) Tiny batch: single full-extent tile (latency path).
    x_small = jax.random.normal(kx1, (8, in_dim), jnp.float32)
    out_small = jax.block_until_ready(ddpg_critic_forward(x_small, params))
    ref_small = _reference(x_small, params)
    assert out_small.shape == (8, 1)
    assert jnp.allclose(out_small, ref_small, atol=1e-4, rtol=5e-4)

    # 2) Medium batch, non-multiple of 128: 2 grid steps, ragged last block
    #    masked by Pallas (no wrapper pad / slice).
    x_med = jax.random.normal(kx2, (300, in_dim), jnp.float32)
    out_med = jax.block_until_ready(ddpg_critic_forward(x_med, params))
    ref_med = _reference(x_med, params)
    assert out_med.shape == (300, 1)
    assert jnp.allclose(out_med, ref_med, atol=1e-4, rtol=5e-4)

    # 2b) Same batch supplied feature-major (caller-side transpose avoided).
    out_med_fm = jax.block_until_ready(
        ddpg_critic_forward(x_med.T, params, x_feature_major=True))
    assert jnp.allclose(out_med_fm, ref_med, atol=1e-4, rtol=5e-4)

    # 3) Larger batch: even grid (2 tiles of 1152 rows) for v7x core balance.
    B = 2304
    x_big = jax.random.normal(kx3, (B, in_dim), jnp.float32)
    out_big = jax.block_until_ready(ddpg_critic_forward(x_big, params))
    ref_big = _reference(x_big, params)
    assert out_big.shape == (B, 1)
    assert jnp.allclose(out_big, ref_big, atol=1e-4, rtol=5e-4)

    print("KERNEL_OK")
</pallas_src>

<mosaic_0001>
module attributes {stable_mosaic.version = 11 : i64} {
  func.func @_critic_kernel(%arg0: i32, %arg1: memref<4x8xf32, #tpu.memory_space<vmem>>, %arg2: memref<64x4xf32, #tpu.memory_space<vmem>>, %arg3: memref<64x1xf32, #tpu.memory_space<vmem>>, %arg4: memref<64x64xf32, #tpu.memory_space<vmem>>, %arg5: memref<64x1xf32, #tpu.memory_space<vmem>>, %arg6: memref<64x1xf32, #tpu.memory_space<vmem>>, %arg7: memref<1x1xf32, #tpu.memory_space<smem>>, %arg8: memref<1x8xf32, #tpu.memory_space<vmem>>) attributes {dimension_semantics = [#tpu.dimension_semantics<parallel>], iteration_bounds = array<i64: 1>, scalar_prefetch = 0 : i64, scratch_operands = 0 : i64, tpu.core_type = #tpu.core_type<tc>, window_params = [{transform_indices = @transform_0, window_bounds = array<i64: 4, 8>}, {pipeline_mode = #tpu.pipeline_mode<synchronous>, transform_indices = @transform_1, window_bounds = array<i64: 64, 4>}, {pipeline_mode = #tpu.pipeline_mode<synchronous>, transform_indices = @transform_2, window_bounds = array<i64: 64, 1>}, {pipeline_mode = #tpu.pipeline_mode<synchronous>, transform_indices = @transform_3, window_bounds = array<i64: 64, 64>}, {pipeline_mode = #tpu.pipeline_mode<synchronous>, transform_indices = @transform_4, window_bounds = array<i64: 64, 1>}, {pipeline_mode = #tpu.pipeline_mode<synchronous>, transform_indices = @transform_5, window_bounds = array<i64: 64, 1>}, {transform_indices = @transform_6, window_bounds = array<i64: 1, 1>}, {transform_indices = @transform_7, window_bounds = array<i64: 1, 8>}]} {
    %c0 = arith.constant 0 : index
    %c0_0 = arith.constant 0 : index
    %0 = vector.load %arg1[%c0, %c0_0] : memref<4x8xf32, #tpu.memory_space<vmem>>, vector<4x8xf32>
    %c0_1 = arith.constant 0 : index
    %c0_2 = arith.constant 0 : index
    %1 = vector.load %arg2[%c0_1, %c0_2] : memref<64x4xf32, #tpu.memory_space<vmem>>, vector<64x4xf32>
    %c0_3 = arith.constant 0 : index
    %c0_4 = arith.constant 0 : index
    %2 = vector.load %arg3[%c0_3, %c0_4] : memref<64x1xf32, #tpu.memory_space<vmem>>, vector<64x1xf32>
    %3 = vector.extract_strided_slice %1 {offsets = [0, 0], sizes = [64, 1], strides = [1, 1]} : vector<64x4xf32> to vector<64x1xf32>
    %4 = vector.extract_strided_slice %0 {offsets = [0, 0], sizes = [1, 8], strides = [1, 1]} : vector<4x8xf32> to vector<1x8xf32>
    %5 = vector.broadcast %3 : vector<64x1xf32> to vector<64x8xf32>
    %6 = vector.broadcast %4 : vector<1x8xf32> to vector<64x8xf32>
    %7 = arith.mulf %5, %6 : vector<64x8xf32>
    %8 = vector.broadcast %2 : vector<64x1xf32> to vector<64x8xf32>
    %9 = arith.addf %8, %7 : vector<64x8xf32>
    %10 = vector.extract_strided_slice %1 {offsets = [0, 1], sizes = [64, 1], strides = [1, 1]} : vector<64x4xf32> to vector<64x1xf32>
    %11 = vector.extract_strided_slice %0 {offsets = [1, 0], sizes = [1, 8], strides = [1, 1]} : vector<4x8xf32> to vector<1x8xf32>
    %12 = vector.broadcast %10 : vector<64x1xf32> to vector<64x8xf32>
    %13 = vector.broadcast %11 : vector<1x8xf32> to vector<64x8xf32>
    %14 = arith.mulf %12, %13 : vector<64x8xf32>
    %15 = arith.addf %9, %14 : vector<64x8xf32>
    %16 = vector.extract_strided_slice %1 {offsets = [0, 2], sizes = [64, 1], strides = [1, 1]} : vector<64x4xf32> to vector<64x1xf32>
    %17 = vector.extract_strided_slice %0 {offsets = [2, 0], sizes = [1, 8], strides = [1, 1]} : vector<4x8xf32> to vector<1x8xf32>
    %18 = vector.broadcast %16 : vector<64x1xf32> to vector<64x8xf32>
    %19 = vector.broadcast %17 : vector<1x8xf32> to vector<64x8xf32>
    %20 = arith.mulf %18, %19 : vector<64x8xf32>
    %21 = arith.addf %15, %20 : vector<64x8xf32>
    %22 = vector.extract_strided_slice %1 {offsets = [0, 3], sizes = [64, 1], strides = [1, 1]} : vector<64x4xf32> to vector<64x1xf32>
    %23 = vector.extract_strided_slice %0 {offsets = [3, 0], sizes = [1, 8], strides = [1, 1]} : vector<4x8xf32> to vector<1x8xf32>
    %24 = vector.broadcast %22 : vector<64x1xf32> to vector<64x8xf32>
    %25 = vector.broadcast %23 : vector<1x8xf32> to vector<64x8xf32>
    %26 = arith.mulf %24, %25 : vector<64x8xf32>
    %27 = arith.addf %21, %26 : vector<64x8xf32>
    %cst = arith.constant 0.000000e+00 : f32
    %28 = vector.broadcast %cst : f32 to vector<64x8xf32>
    %29 = arith.maximumf %27, %28 : vector<64x8xf32>
    %c0_5 = arith.constant 0 : index
    %c0_6 = arith.constant 0 : index
    %30 = vector.load %arg4[%c0_5, %c0_6] : memref<64x64xf32, #tpu.memory_space<vmem>>, vector<64x64xf32>
    %cst_7 = arith.constant dense<0.000000e+00> : vector<64x8xf32>
    %31 = tpu.matmul %30, %29, %cst_7 {dimension_numbers = #tpu.dot_dimension_numbers<[1], [0], [0], [1], [0, 0, 1, 1], [], []>} : vector<64x64xf32>, vector<64x8xf32>, vector<64x8xf32> -> vector<64x8xf32>
    %c0_8 = arith.constant 0 : index
    %c0_9 = arith.constant 0 : index
    %32 = vector.load %arg5[%c0_8, %c0_9] : memref<64x1xf32, #tpu.memory_space<vmem>>, vector<64x1xf32>
    %33 = vector.broadcast %32 : vector<64x1xf32> to vector<64x8xf32>
    %34 = arith.addf %31, %33 : vector<64x8xf32>
    %cst_10 = arith.constant 0.000000e+00 : f32
    %35 = vector.broadcast %cst_10 : f32 to vector<64x8xf32>
    %36 = arith.maximumf %34, %35 : vector<64x8xf32>
    %c0_11 = arith.constant 0 : index
    %c0_12 = arith.constant 0 : index
    %37 = vector.load %arg6[%c0_11, %c0_12] : memref<64x1xf32, #tpu.memory_space<vmem>>, vector<64x1xf32>
    %38 = vector.broadcast %37 : vector<64x1xf32> to vector<64x8xf32>
    %39 = arith.mulf %36, %38 : vector<64x8xf32>
    %cst_13 = arith.constant dense<0.000000e+00> : vector<8xf32>
    %40 = vector.multi_reduction <add>, %39, %cst_13 [0] : vector<64x8xf32> to vector<8xf32>
    %41 = vector.shape_cast %40 : vector<8xf32> to vector<1x8xf32>
    %c0_14 = arith.constant 0 : index
    %c0_15 = arith.constant 0 : index
    %42 = memref.load %arg7[%c0_14, %c0_15] : memref<1x1xf32, #tpu.memory_space<smem>>
    %43 = vector.broadcast %42 : f32 to vector<1x8xf32>
    %44 = arith.addf %41, %43 : vector<1x8xf32>
    %c0_16 = arith.constant 0 : index
    %c0_17 = arith.constant 0 : index
    %45 = vector.load %arg8[%c0_16, %c0_17] : memref<1x8xf32, #tpu.memory_space<vmem>>, vector<1x8xf32>
    tpu.vector_store %arg8[%c0_16, %c0_17], %44 {strides = array<i32>} : memref<1x8xf32, #tpu.memory_space<vmem>>, vector<1x8xf32>,
    return
  }
  func.func @transform_0(%arg0: i32) -> (i32, i32) {
    %c0_i32 = arith.constant 0 : i32
    %c0_i32_0 = arith.constant 0 : i32
    return %c0_i32, %arg0 : i32, i32
  }
  func.func @transform_1(%arg0: i32) -> (i32, i32) {
    %c0_i32 = arith.constant 0 : i32
    %c0_i32_0 = arith.constant 0 : i32
    %c0_i32_1 = arith.constant 0 : i32
    return %c0_i32, %c0_i32_0 : i32, i32
  }
  func.func @transform_2(%arg0: i32) -> (i32, i32) {
    %c0_i32 = arith.constant 0 : i32
    %c0_i32_0 = arith.constant 0 : i32
    %c0_i32_1 = arith.constant 0 : i32
    return %c0_i32, %c0_i32_0 : i32, i32
  }
  func.func @transform_3(%arg0: i32) -> (i32, i32) {
    %c0_i32 = arith.constant 0 : i32
    %c0_i32_0 = arith.constant 0 : i32
    %c0_i32_1 = arith.constant 0 : i32
    return %c0_i32, %c0_i32_0 : i32, i32
  }
  func.func @transform_4(%arg0: i32) -> (i32, i32) {
    %c0_i32 = arith.constant 0 : i32
    %c0_i32_0 = arith.constant 0 : i32
    %c0_i32_1 = arith.constant 0 : i32
    return %c0_i32, %c0_i32_0 : i32, i32
  }
  func.func @transform_5(%arg0: i32) -> (i32, i32) {
    %c0_i32 = arith.constant 0 : i32
    %c0_i32_0 = arith.constant 0 : i32
    %c0_i32_1 = arith.constant 0 : i32
    return %c0_i32, %c0_i32_0 : i32, i32
  }
  func.func @transform_6(%arg0: i32) -> (i32, i32) {
    %c0_i32 = arith.constant 0 : i32
    %c0_i32_0 = arith.constant 0 : i32
    %c0_i32_1 = arith.constant 0 : i32
    return %c0_i32, %c0_i32_0 : i32, i32
  }
  func.func @transform_7(%arg0: i32) -> (i32, i32) {
    %c0_i32 = arith.constant 0 : i32
    %c0_i32_0 = arith.constant 0 : i32
    return %c0_i32, %arg0 : i32, i32
  }
}

</mosaic_0001>

<bundles_post_ra>
// kernel: tpu_custom_call.1
= control target key start
LH: loop header
LB: loop body
LE: loop exit
PB: predicated region body
PF: predicated region fallthrough
CT: control target
= control target key end

     0   :  { %v730_v2 = vmov 2   ;;  %v731_v3 = vmov 0   ;;  %s1008_s0 = inlined_call_operand.vmem [shape: f32[4,8], index: 0, kind: input, shape index: {}]   ;;  %s1009_s1 = inlined_call_operand.vmem [shape: f32[64,4], index: 1, kind: input, shape index: {}]   ;;  %s1010_s2 = inlined_call_operand.vmem [shape: f32[64,1], index: 2, kind: input, shape index: {}]   ;;  %s1011_s3 = inlined_call_operand.vmem [shape: f32[64,64], index: 3, kind: input, shape index: {}]   ;;  %s1012_s4 = inlined_call_operand.vmem [shape: f32[64,1], index: 4, kind: input, shape index: {}]   ;;  %s1013_s5 = inlined_call_operand.vmem [shape: f32[64,1], index: 5, kind: input, shape index: {}]   ;;  %s1014_s6 = inlined_call_operand.<no memory space> [shape: f32[1,1], index: 6, kind: input, shape index: {}]   ;;  %s1015_s7 = inlined_call_operand.hbm [shape: f32[1,8], index: 7, kind: output, shape index: {}]  }
   0x1   :  { %v37_v0 = vld [vmem:[%s1010_s2] sm:$0xff]  ;;  %v31_v1 = vld [vmem:[%s1009_s1 + $0x10] sm:$0xff]  ;;  %689 = vset.pattern.permute.xlu0 %v730_v2  ;;  %681 = vset.pattern.permute.xlu1 %v731_v3  ;;  %v38_v4 = vld [vmem:[%s1010_s2 + $0x8] sm:$0xff] }
   0x2   :  { %99 = vperm.xlu1 %681, %v37_v0   ;;  %206 = vperm.xlu0 %689, %v31_v1   ;;  %v29_v5 = vld [vmem:[%s1009_s1] sm:$0xff] }
   0x3   :  { %13 = vsyncpa [#allocation4], 0  ;;  %v30_v6 = vld [vmem:[%s1009_s1 + $0x8] sm:$0xff]  ;;  %v732_v7 = vmov 1   ;;  %v32_v8 = vld [vmem:[%s1009_s1 + $0x18] sm:$0xff]  ;;  %v733_v14 = vmov 3   ;;  %v85_v41 = vlaneseq }
   0x4   :  { %v39_v9 = vld [vmem:[%s1010_s2 + $0x10] sm:$0xff]  ;;  %v42_v10 = vld [vmem:[%s1010_s2 + $0x28] sm:$0xff]  ;;  %v36_v11 = vld [vmem:[%s1009_s1 + $0x38] sm:$0xff]  ;;  %vm365_vm0 = vcmask 523264   ;;  %vm559_vm1 = vcmask 64512   ;;  %vm584_vm2 = vcmask 57344  }
   0x5   :  { %v40_v12 = vld [vmem:[%s1010_s2 + $0x18] sm:$0xff]  ;;  %v43_v13 = vld [vmem:[%s1010_s2 + $0x30] sm:$0xff]  ;;  %v33_v16 = vld [vmem:[%s1009_s1 + $0x20] sm:$0xff]  ;;  %v86_v46 = vshrl.u32 %v85_v41, 7 }
   0x6   :  { %104 = vperm.xlu1 %681, %v38_v4   ;;  %690 = vset.pattern.permute.xlu0 %v731_v3  ;;  %v35_v15 = vld [vmem:[%s1009_s1 + $0x30] sm:$0xff]  ;;  %v34_v17 = vld [vmem:[%s1009_s1 + $0x28] sm:$0xff]  ;;  %v41_v18 = vld [vmem:[%s1010_s2 + $0x20] sm:$0xff]  ;;  %s734_s1 = smov [#allocation3]  }
   0x7   :  { %47 = vperm.xlu0 %690, %v29_v5   ;;  %v44_v19 = vld [vmem:[%s1010_s2 + $0x38] sm:$0xff]  ;;  %v309_v20 = vld [vmem:[%s1011_s3] sm:$0xff]  ;;  %v318_v24 = vld [vmem:[%s1012_s4 + $0x8] sm:$0xff]  ;;  %v87_v51 = vsub.s32 0, %v86_v46  ;;  %v179_v58 = vsub.s32 1, %v86_v46  ;;  %v231_v60 = vsub.s32 2, %v86_v46 }
   0x8   :  { %v313_v21 = vld [vmem:[%s1011_s3 + $0x20] sm:$0xff]  ;;  %640 = vmatprep.mubr.msk.f32.mxu0 %vm365_vm0, %v309_v20  ;;  %v319_v28 = vld [vmem:[%s1012_s4 + $0x10] sm:$0xff]  ;;  %v320_v29 = vld [vmem:[%s1012_s4 + $0x18] sm:$0xff]  ;;  %s592_s8 = sshll.u32 %s734_s1, 4  ;;  %s593_s8 = int_to_ptr.vmem [resolvable:$true] %s592_s8 }
   0x9   :  { %646 = vmatprep.mubr.msk.f32.mxu1 %vm365_vm0, %v313_v21  ;;  %v317_v25 = vld [vmem:[%s1012_s4] sm:$0xff]  ;;  %v504_v33 = vld [vmem:[%s1013_s5 + $0x8] sm:$0xff]  ;;  %v505_v36 = vld [vmem:[%s1013_s5 + $0x10] sm:$0xff]  ;;  %s706_s9 = scalar_lea.vmem %s593_s8, 16  ;;  %s710_s10 = scalar_lea.vmem %s593_s8, 32 }
   0xa   :  { %682 = vset.pattern.permute.xlu1 %v732_v7  ;;  %v503_v32 = vld [vmem:[%s1013_s5] sm:$0xff]  ;;  %v322_v39 = vld [vmem:[%s1012_s4 + $0x28] sm:$0xff]  ;;  %v506_v40 = vld [vmem:[%s1013_s5 + $0x18] sm:$0xff]  ;;  %p707_p0 = scmp.ne.s32.totalorder %s593_s8, %s706_s9  ;;  %p711_p1 = scmp.lt.s32.totalorder %s593_s8, %s593_s8 }
   0xb   :  { %150 = vperm.xlu1 %682, %v30_v6   ;;  %52 = vperm.xlu0 %690, %v30_v6   ;;  %v321_v35 = vld [vmem:[%s1012_s4 + $0x20] sm:$0xff]  ;;  %v323_v44 = vld [vmem:[%s1012_s4 + $0x30] sm:$0xff]  ;;  %v324_v49 = vld [vmem:[%s1012_s4 + $0x38] sm:$0xff]  ;;  %p712_p2 = scmp.lt.s32.totalorder %s710_s10, %s706_s9 }
   0xc   :  { %v507_v45 = vld [vmem:[%s1013_s5 + $0x20] sm:$0xff]  ;;  %v508_v50 = vld [vmem:[%s1013_s5 + $0x28] sm:$0xff]  ;;  %v509_v55 = vld [vmem:[%s1013_s5 + $0x30] sm:$0xff] }
   0xd   :  { %v28_v52 = vld [vmem:[%s1008_s0] sm:$0xf]  ;;  %v510_v56 = vld [vmem:[%s1013_s5 + $0x38] sm:$0xff]  ;;  %p713_p3 = por %p712_p2, %p711_p1 }
   0xe   :  { %v913_v57 = vrot.slane %v28_v52, %v87_v51  ;;  %v916_v62 = vrot.slane %v28_v52, %v179_v58 }
   0xf   :  { %683 = vset.pattern.permute.xlu1 %v731_v3  ;;  %62 = vperm.xlu0 %690, %v32_v8   ;;  %p714_p4 = pnand %p713_p3, %p707_p0 }
  0x10   :  { %57 = vperm.xlu1 %683, %v31_v1  }
  0x13   :  { %109 = vperm.xlu0 %690, %v39_v9  }
  0x14   :  { %684 = vset.pattern.permute.xlu1 %v730_v2 }
  0x15   :  { %198 = vperm.xlu1 %684, %v29_v5  }
  0x17   :  { %124 = vperm.xlu0 %690, %v42_v10  }
  0x19   :  { %202 = vperm.xlu1 %684, %v30_v6  }
  0x1b   :  { %82 = vperm.xlu0 %690, %v36_v11  }
  0x1d   :  { %685 = vset.pattern.permute.xlu1 %v731_v3 }
  0x1e   :  { %114 = vperm.xlu1 %685, %v40_v12  }
  0x1f   :  { %129 = vperm.xlu0 %690, %v43_v13  }
  0x22   :  { %686 = vset.pattern.permute.xlu1 %v732_v7 }
  0x23   :  { %697 = vset.pattern.permute.xlu0 %v732_v7  ;;  %158 = vperm.xlu1 %686, %v32_v8  }
  0x24   :  { %146 = vperm.xlu0 %697, %v29_v5  }
  0x27   :  { %687 = vset.pattern.permute.xlu1 %v733_v14 }
  0x28   :  { %154 = vperm.xlu0 %697, %v31_v1   ;;  %250 = vperm.xlu1 %687, %v29_v5  }
  0x2c   :  { %170 = vperm.xlu0 %697, %v35_v15   ;;  %688 = vset.pattern.permute.xlu1 %v731_v3 }
  0x2d   :  { %67 = vperm.xlu1 %688, %v33_v16  }
  0x30   :  { %699 = vset.pattern.permute.xlu0 %v733_v14 }
  0x31   :  { %254 = vperm.xlu0 %699, %v30_v6   ;;  %72 = vperm.xlu1 %688, %v34_v17  }
  0x35   :  { %258 = vperm.xlu0 %699, %v31_v1   ;;  %691 = vset.pattern.permute.xlu1 %v730_v2  ;;  %v283_v1 = vsub.s32 3, %v86_v46 }
  0x36   :  { %210 = vperm.xlu1 %691, %v32_v8  }
  0x39   :  { %270 = vperm.xlu0 %699, %v34_v17  }
  0x3a   :  { %692 = vset.pattern.permute.xlu1 %v731_v3 }
  0x3b   :  { %119 = vperm.xlu1 %692, %v41_v18  }
  0x3d   :  { %274 = vperm.xlu0 %699, %v35_v15  }
  0x3f   :  { %693 = vset.pattern.permute.xlu1 %v732_v7 }
  0x40   :  { %162 = vperm.xlu1 %693, %v33_v16  }
  0x41   :  { %704 = vset.pattern.permute.xlu0 %v731_v3 }
  0x42   :  { %327 = vperm.xlu0 %704, %v317_v25  }
  0x44   :  { %166 = vperm.xlu1 %693, %v34_v17  }
  0x46   :  { %342 = vperm.xlu0 %704, %v320_v29  }
  0x48   :  { %694 = vset.pattern.permute.xlu1 %v733_v14 }
  0x49   :  { %262 = vperm.xlu1 %694, %v32_v8   ;;  %v922_v8 = vrot.slane %v28_v52, %v283_v1 }
  0x4a   :  { %518 = vperm.xlu0 %704, %v504_v33  }
  0x4d   :  { %695 = vset.pattern.permute.xlu1 %v731_v3 }
  0x4e   :  { %77 = vperm.xlu1 %695, %v35_v15   ;;  %523 = vperm.xlu0 %704, %v505_v36  }
  0x52   :  { %696 = vset.pattern.permute.xlu1 %v730_v2  ;;  %528 = vperm.xlu0 %704, %v506_v40  }
  0x53   :  { %214 = vperm.xlu1 %696, %v33_v16  }
  0x56   :  { %533 = vperm.xlu0 %704, %v507_v45  }
  0x57   :  { %218 = vperm.xlu1 %696, %v34_v17  }
  0x5a   :  { %538 = vperm.xlu0 %704, %v508_v50  }
  0x5b   :  { %698 = vset.pattern.permute.xlu1 %v731_v3 }
  0x5c   :  { %134 = vperm.xlu1 %698, %v44_v19  }
  0x5e   :  { %548 = vperm.xlu0 %704, %v510_v56  }
  0x60   :  { %700 = vset.pattern.permute.xlu1 %v732_v7 }
  0x61   :  { %174 = vperm.xlu1 %700, %v36_v11  }
  0x65   :  { %701 = vset.pattern.permute.xlu1 %v733_v14 }
  0x66   :  { %266 = vperm.xlu1 %701, %v33_v16  }
  0x6a   :  { %702 = vset.pattern.permute.xlu1 %v730_v2  ;;  %v919_v2 = vrot.slane %v28_v52, %v231_v60 }
  0x6b   :  { %222 = vperm.xlu1 %702, %v35_v15  }
  0x6f   :  { %226 = vperm.xlu1 %702, %v36_v11  }
  0x73   :  { %703 = vset.pattern.permute.xlu1 %v733_v14 }
  0x74   :  { %278 = vperm.xlu1 %703, %v36_v11  }
  0x78   :  { %705 = vset.pattern.permute.xlu1 %v731_v3 }
  0x79   :  { %332 = vperm.xlu1 %705, %v318_v24  }
  0x7d   :  { %337 = vperm.xlu1 %705, %v319_v28  }
  0x81   :  { %v100_v22 = vpop.permute.xlu1 %99  ;;  %v846_v23 = vpop.permute.xlu0 %206  ;;  %513 = vperm.xlu1 %705, %v503_v32  }
  0x85   :  { %v854_v26 = vpop.permute.xlu1 %104  ;;  %347 = vperm.xlu1 %705, %v321_v35  }
  0x86   :  { %v48_v27 = vpop.permute.xlu0 %47 }
  0x87   :  { %v89_v61 = vmul.f32 %v913_v57, %v48_v27 }
  0x89   :  { %352 = vperm.xlu1 %705, %v322_v39   ;;  %v137_v3 = vadd.f32 %v100_v22, %v89_v61  ;;  %v235_v39 = vmul.f32 %v919_v2, %v846_v23 }
  0x8a   :  { %v151_v30 = vpop.permute.xlu1 %150  ;;  %v53_v31 = vpop.permute.xlu0 %52 }
  0x8b   :  { %v90_v4 = vmul.f32 %v913_v57, %v53_v31  ;;  %v182_v13 = vmul.f32 %v916_v62, %v151_v30 }
  0x8d   :  { %357 = vperm.xlu1 %705, %v323_v44   ;;  %v138_v9 = vadd.f32 %v854_v26, %v90_v4 }
  0x8e   :  { %v868_v34 = vpop.permute.xlu0 %62 }
  0x8f   :  { %v876_v37 = vpop.permute.xlu1 %57  ;;  %v190_v17 = vadd.f32 %v182_v13, %v138_v9  ;;  %v92_v33 = vmul.f32 %v913_v57, %v868_v34 }
  0x90   :  { %v91_v30 = vmul.f32 %v913_v57, %v876_v37 }
  0x91   :  { %362 = vperm.xlu1 %705, %v324_v49  }
  0x92   :  { %v878_v38 = vpop.permute.xlu0 %109 }
  0x93   :  { %v139_v35 = vadd.f32 %v878_v38, %v91_v30 }
  0x94   :  { %v199_v42 = vpop.permute.xlu1 %198 }
  0x95   :  { %543 = vperm.xlu1 %705, %v509_v55   ;;  %v233_v10 = vmul.f32 %v919_v2, %v199_v42 }
  0x96   :  { %v886_v43 = vpop.permute.xlu0 %124 }
  0x98   :  { %v203_v47 = vpop.permute.xlu1 %202 }
  0x99   :  { %v234_v14 = vmul.f32 %v919_v2, %v203_v47 }
  0x9a   :  { %v894_v48 = vpop.permute.xlu0 %82 }
  0x9b   :  { %v242_v20 = vadd.f32 %v234_v14, %v190_v17 }
  0x9d   :  { %v115_v53 = vpop.permute.xlu1 %114 }
  0x9e   :  { %v905_v54 = vpop.permute.xlu0 %129  ;;  %v140_v44 = vadd.f32 %v115_v53, %v92_v33 }
  0xa2   :  { %v159_v59 = vpop.permute.xlu1 %158 }
  0xa3   :  { %v147_v63 = vpop.permute.xlu0 %146  ;;  %v184_v40 = vmul.f32 %v916_v62, %v159_v59 }
  0xa4   :  { %v181_v0 = vmul.f32 %v916_v62, %v147_v63 }
  0xa5   :  { %v192_v46 = vadd.f32 %v184_v40, %v140_v44  ;;  %v314_v44 = vld [vmem:[%s1011_s3 + $0x28] sm:$0xff] }
  0xa6   :  { %v189_v7 = vadd.f32 %v181_v0, %v137_v3 }
  0xa7   :  { %v155_v5 = vpop.permute.xlu0 %154  ;;  %v251_v6 = vpop.permute.xlu1 %250 }
  0xa8   :  { %v241_v15 = vadd.f32 %v233_v10, %v189_v7  ;;  %v285_v16 = vmul.f32 %v922_v8, %v251_v6  ;;  %v183_v31 = vmul.f32 %v916_v62, %v155_v5 }
  0xaa   :  { %v293_v21 = vadd.f32 %v285_v16, %v241_v15  ;;  %v191_v41 = vadd.f32 %v183_v31, %v139_v35 }
  0xab   :  { %v171_v11 = vpop.permute.xlu0 %170 }
  0xac   :  { %v68_v12 = vpop.permute.xlu1 %67  ;;  %v301_v25 = vmax.f32 %v293_v21, 0.0  ;;  %v243_v47 = vadd.f32 %v235_v39, %v191_v41  ;;  %v187_v56 = vmul.f32 %v916_v62, %v171_v11 }
  0xad   :  { %v93_v7 = vmul.f32 %v913_v57, %v68_v12 }
  0xb0   :  { %v255_v18 = vpop.permute.xlu0 %254  ;;  %v73_v19 = vpop.permute.xlu1 %72 }
  0xb1   :  { %v286_v22 = vmul.f32 %v922_v8, %v255_v18  ;;  %v94_v0 = vmul.f32 %v913_v57, %v73_v19 }
  0xb3   :  { %v294_v24 = vadd.f32 %v286_v22, %v242_v20  ;;  %v142_v4 = vadd.f32 %v886_v43, %v94_v0 }
  0xb4   :  { %v259_v36 = vpop.permute.xlu0 %258 }
  0xb5   :  { %v302_v26 = vmax.f32 %v294_v24, 0.0  ;;  %v211_v27 = vpop.permute.xlu1 %210  ;;  %v287_v45 = vmul.f32 %v922_v8, %v259_v36 }
  0xb6   :  { %v236_v37 = vmul.f32 %v919_v2, %v211_v27 }
  0xb7   :  { %v652_v28 = vpack.c.bf16 %v302_v26, %v301_v25  ;;  %v295_v50 = vadd.f32 %v287_v45, %v243_v47  ;;  %v96_v26 = vmul.f32 %v913_v57, %v894_v48  ;;  %v315_v45 = vld [vmem:[%s1011_s3 + $0x30] sm:$0xff] }
  0xb8   :  { %v244_v34 = vadd.f32 %v236_v37, %v192_v46  ;;  %v271_v6 = vpop.permute.xlu0 %270  ;;  %v312_v37 = vld [vmem:[%s1011_s3 + $0x18] sm:$0xff] }
  0xb9   :  { %653 = vmatprep.subr.bf16.mxu0 %v652_v28  ;;  %668 = vmatprep.subr.bf16.mxu1 %v652_v28  ;;  %v303_v52 = vmax.f32 %v295_v50, 0.0  ;;  %v290_v15 = vmul.f32 %v922_v8, %v271_v6  ;;  %v316_v46 = vld [vmem:[%s1011_s3 + $0x38] sm:$0xff] }
  0xba   :  { %v120_v29 = vpop.permute.xlu1 %119  ;;  %655 = vmatpush3.bf16.msra.mxu0 %v652_v28  ;;  %672 = vmatpush3.bf16.msra.mxu1 %v652_v28 }
  0xbb   :  { %v141_v11 = vadd.f32 %v120_v29, %v93_v7 }
  0xbc   :  { %v275_v29 = vpop.permute.xlu0 %274 }
  0xbd   :  { %v291_v35 = vmul.f32 %v922_v8, %v275_v29 }
  0xbf   :  { %v163_v32 = vpop.permute.xlu1 %162 }
  0xc3   :  { %v167_v42 = vpop.permute.xlu1 %166 }
  0xc4   :  { %v186_v3 = vmul.f32 %v916_v62, %v167_v42 }
  0xc6   :  { %v194_v9 = vadd.f32 %v186_v3, %v142_v4 }
  0xc8   :  { %v263_v49 = vpop.permute.xlu1 %262 }
  0xc9   :  { %v288_v38 = vmul.f32 %v922_v8, %v263_v49  ;;  %v328_v49 = vpop.permute.xlu0 %327 }
  0xcb   :  { %v296_v51 = vadd.f32 %v288_v38, %v244_v34 }
  0xcd   :  { %v304_v55 = vmax.f32 %v296_v51, 0.0  ;;  %v78_v23 = vpop.permute.xlu1 %77  ;;  %v343_v34 = vpop.permute.xlu0 %342 }
  0xce   :  { %v95_v58 = vmul.f32 %v913_v57, %v78_v23 }
  0xcf   :  { %v656_v53 = vpack.c.bf16 %v304_v55, %v303_v52 }
  0xd0   :  { %v143_v59 = vadd.f32 %v905_v54, %v95_v58  ;;  %v185_v54 = vmul.f32 %v916_v62, %v163_v32 }
  0xd1   :  { %657 = vmatprep.subr.bf16.mxu0 %v656_v53  ;;  %669 = vmatprep.subr.bf16.mxu1 %v656_v53  ;;  %v519_v51 = vpop.permute.xlu0 %518 }
  0xd2   :  { %v215_v60 = vpop.permute.xlu1 %214  ;;  %659 = vmatpush3.bf16.msra.mxu0 %v656_v53  ;;  %673 = vmatpush3.bf16.msra.mxu1 %v656_v53  ;;  %v195_v61 = vadd.f32 %v187_v56, %v143_v59  ;;  %v193_v16 = vadd.f32 %v185_v54, %v141_v11 }
  0xd3   :  { %v237_v13 = vmul.f32 %v919_v2, %v215_v60 }
  0xd5   :  { %v245_v18 = vadd.f32 %v237_v13, %v193_v16  ;;  %v524_v55 = vpop.permute.xlu0 %523 }
  0xd6   :  { %v219_v63 = vpop.permute.xlu1 %218 }
  0xd7   :  { %v238_v5 = vmul.f32 %v919_v2, %v219_v63 }
  0xd9   :  { %v246_v14 = vadd.f32 %v238_v5, %v194_v9  ;;  %v529_v56 = vpop.permute.xlu0 %528 }
  0xdb   :  { %v135_v1 = vpop.permute.xlu1 %134  ;;  %v298_v19 = vadd.f32 %v290_v15, %v246_v14 }
  0xdc   :  { %v144_v30 = vadd.f32 %v135_v1, %v96_v26 }
  0xdd   :  { %v306_v21 = vmax.f32 %v298_v19, 0.0  ;;  %v534_v1 = vpop.permute.xlu0 %533 }
  0xe0   :  { %v175_v10 = vpop.permute.xlu1 %174 }
  0xe1   :  { %v188_v27 = vmul.f32 %v916_v62, %v175_v10 }
  0xe3   :  { %v196_v33 = vadd.f32 %v188_v27, %v144_v30  ;;  %v539_v27 = vpop.permute.xlu0 %538 }
  0xe5   :  { %v267_v17 = vpop.permute.xlu1 %266 }
  0xe6   :  { %v289_v43 = vmul.f32 %v922_v8, %v267_v17 }
  0xe8   :  { %v297_v20 = vadd.f32 %v289_v43, %v245_v18 }
  0xea   :  { %v305_v22 = vmax.f32 %v297_v20, 0.0  ;;  %v223_v12 = vpop.permute.xlu1 %222 }
  0xeb   :  { %v239_v25 = vmul.f32 %v919_v2, %v223_v12 }
  0xec   :  { %v660_v24 = vpack.c.bf16 %v306_v21, %v305_v22 }
  0xed   :  { %v247_v31 = vadd.f32 %v239_v25, %v195_v61 }
  0xee   :  { %v227_v28 = vpop.permute.xlu1 %226  ;;  %661 = vmatprep.subr.bf16.mxu0 %v660_v24  ;;  %670 = vmatprep.subr.bf16.mxu1 %v660_v24 }
  0xef   :  { %663 = vmatpush3.bf16.msra.mxu0 %v660_v24  ;;  %674 = vmatpush3.bf16.msra.mxu1 %v660_v24  ;;  %v240_v32 = vmul.f32 %v919_v2, %v227_v28  ;;  %v299_v39 = vadd.f32 %v291_v35, %v247_v31  ;;  %v310_v2 = vld [vmem:[%s1011_s3 + $0x8] sm:$0xff] }
  0xf1   :  { %v248_v40 = vadd.f32 %v240_v32, %v196_v33  ;;  %v307_v62 = vmax.f32 %v299_v39, 0.0 }
  0xf3   :  { %v279_v36 = vpop.permute.xlu1 %278 }
  0xf4   :  { %v292_v48 = vmul.f32 %v922_v8, %v279_v36  ;;  %v311_v8 = vld [vmem:[%s1011_s3 + $0x10] sm:$0xff] }
  0xf6   :  { %v300_v57 = vadd.f32 %v292_v48, %v248_v40 }
  0xf8   :  { %v308_v41 = vmax.f32 %v300_v57, 0.0  ;;  %v333_v47 = vpop.permute.xlu1 %332  ;;  %v549_v57 = vpop.permute.xlu0 %548 }
  0xfa   :  { %v664_v42 = vpack.c.bf16 %v308_v41, %v307_v62 }
  0xfc   :  { %665 = vmatprep.subr.bf16.mxu0 %v664_v42  ;;  %671 = vmatprep.subr.bf16.mxu1 %v664_v42  ;;  %v338_v50 = vpop.permute.xlu1 %337 }
  0xfd   :  { %667 = vmatpush3.bf16.msra.mxu0 %v664_v42  ;;  %675 = vmatpush3.bf16.msra.mxu1 %v664_v42 }
 0x100   :  { %641 = vmatmul.mubr.msk.f32.vlgmr.msra.gmra.mrb[0].mxu0 %vm365_vm0, %v310_v2  ;;  %647 = vmatmul.mubr.msk.f32.vlgmr.msra.gmra.mrb[0].mxu1 %vm365_vm0, %v314_v44  ;;  %v514_v38 = vpop.permute.xlu1 %513 }
 0x101   :  { %643 = vmatprep.mubr.msk.f32.mxu0 %vm365_vm0, %v311_v8  ;;  %649 = vmatprep.mubr.msk.f32.mxu1 %vm365_vm0, %v315_v45 }
 0x104   :  { %644 = vmatmul.mubr.msk.f32.gmra.mrb[2].mxu0 %vm365_vm0, %v312_v37  ;;  %650 = vmatmul.mubr.msk.f32.gmra.mrb[2].mxu1 %vm365_vm0, %v316_v46  ;;  %v348_v52 = vpop.permute.xlu1 %347 }
 0x108   :  { %v353_v23 = vpop.permute.xlu1 %352 }
 0x10c   :  { %v358_v0 = vpop.permute.xlu1 %357 }
 0x110   :  { %v363_v21 = vpop.permute.xlu1 %362 }
 0x114   :  { %v544_v36 = vpop.permute.xlu1 %543 }
 0x1d3   :  { %v642_v58 = vpop.f32.mrb[0].mxu0  ;;  %v648_v53 = vpop.f32.mrb[0].mxu1 }
 0x1d4   :  { %v462_v59 = vadd.f32 %v642_v58, %v333_v47  ;;  %v456_v60 = vpop.f32.mrb[1].mxu0  ;;  %v476_v61 = vpop.f32.mrb[1].mxu1  ;;  %v482_v13 = vadd.f32 %v648_v53, %v353_v23 }
 0x1d5   :  { %v457_v63 = vadd.f32 %v456_v60, %v328_v49  ;;  %v477_v5 = vadd.f32 %v476_v61, %v348_v52 }
 0x1d6   :  { %v496_v3 = vmax.f32 %v462_v59, 0.0  ;;  %v500_v12 = vmax.f32 %v482_v13, 0.0 }
 0x1d7   :  { %v495_v4 = vmax.f32 %v457_v63, 0.0  ;;  %v645_v6 = vpop.f32.mrb[2].mxu0  ;;  %v651_v7 = vpop.f32.mrb[2].mxu1  ;;  %v499_v19 = vmax.f32 %v477_v5, 0.0 }
 0x1d8   :  { %v552_v54 = vmul.f32 %v519_v51, %v496_v3  ;;  %v472_v9 = vadd.f32 %v645_v6, %v343_v34  ;;  %v466_v10 = vpop.f32.mrb[3].mxu0  ;;  %v486_v11 = vpop.f32.mrb[3].mxu1  ;;  %v492_v25 = vadd.f32 %v651_v7, %v363_v21  ;;  %v556_v32 = vmul.f32 %v539_v27, %v500_v12 }
 0x1d9   :  { %v551_v14 = vmul.f32 %v514_v38, %v495_v4  ;;  %v467_v15 = vadd.f32 %v466_v10, %v338_v50  ;;  %v487_v20 = vadd.f32 %v486_v11, %v358_v0  ;;  %v555_v28 = vmul.f32 %v534_v1, %v499_v19 }
 0x1da   :  { %v561_v16 = vsel %vm559_vm1, %v552_v54, 0.0  ;;  %v498_v17 = vmax.f32 %v472_v9, 0.0  ;;  %v502_v35 = vmax.f32 %v492_v25, 0.0  ;;  %v569_v41 = vsel %vm559_vm1, %v556_v32, 0.0 }
 0x1db   :  { %v560_v18 = vsel %vm559_vm1, %v551_v14, 0.0  ;;  %v497_v43 = vmax.f32 %v467_v15, 0.0  ;;  %v501_v30 = vmax.f32 %v487_v20, 0.0  ;;  %v567_v40 = vsel %vm559_vm1, %v555_v28, 0.0 }
 0x1dc   :  { %v562_v22 = vadd.f32 %v561_v16, %v560_v18  ;;  %v554_v24 = vmul.f32 %v529_v56, %v498_v17  ;;  %v558_v42 = vmul.f32 %v549_v57, %v502_v35  ;;  %v582_v38 = vstv %s1014_s6 }
 0x1dd   :  { %v553_v26 = vmul.f32 %v524_v55, %v497_v43  ;;  %v557_v48 = vmul.f32 %v544_v36, %v501_v30 }
 0x1de   :  { %v565_v33 = vsel %vm559_vm1, %v554_v24, 0.0  ;;  %v573_v45 = vsel %vm559_vm1, %v558_v42, 0.0 }
 0x1df   :  { %v563_v29 = vsel %vm559_vm1, %v553_v26, 0.0  ;;  %v571_v44 = vsel %vm559_vm1, %v557_v48, 0.0 }
 0x1e0   :  { %v564_v31 = vadd.f32 %v563_v29, %v562_v22 }
 0x1e2   :  { %v566_v39 = vadd.f32 %v565_v33, %v564_v31 }
 0x1e4   :  { %v568_v62 = vadd.f32 %v567_v40, %v566_v39 }
 0x1e6   :  { %v570_v2 = vadd.f32 %v569_v41, %v568_v62 }
 0x1e8   :  { %v572_v8 = vadd.f32 %v571_v44, %v570_v2 }
 0x1ea   :  { %v574_v37 = vadd.f32 %v573_v45, %v572_v8 }
 0x1ec   :  { %v575_v46 = vrot.slane %v574_v37, 4 }
 0x1ee   :  { %v576_v47 = vadd.f32 %v575_v46, %v574_v37 }
 0x1f0   :  { %v577_v49 = vrot.slane %v576_v47, 2 }
 0x1f2   :  { %v578_v50 = vadd.f32 %v577_v49, %v576_v47 }
 0x1f4   :  { %v579_v34 = vrot.slane %v578_v50, 1 }
 0x1f6   :  { %v580_v51 = vadd.f32 %v579_v34, %v578_v50 }
 0x1f8   :  { %v583_v52 = vadd.f32 %v582_v38, %v580_v51 }
 0x1fa   :  { %585 = vst.msk [vmem:[#allocation3] sm:$0x1] %vm584_vm2, %v583_v52 }
 0x1fb   :  { %717 = shalt.err (!%p714_p4)
}
 0x1fc   :  { %s718_s12 = scalar_lea.hbm %s1015_s7, 16 }
 0x1fd   :  { %p719_p5 = scmp.ne.s32.totalorder %s1015_s7, %s718_s12  ;;  %p722_p6 = scmp.lt.u32.totalorder %s718_s12, %s1015_s7 }
 0x1ff   :  { %p724_p7 = pnand %p722_p6, %p719_p5 }
 0x201   :  { %727 = shalt.err (!%p724_p7)
}
 0x202   :  { %595 = dma.vmem_to_hbm [thread:$0]  %s593_s8, 16, %s1015_s7, [#allocation4]  }
 0x203   :  { %728 = dma.done.wait [#allocation4], 16  }
 0x204   :  { %729 = vsyncadd [#allocation4], 4294967280 }
 0x205   :  { %599 = vsyncpa [#allocation4], 1 }

</bundles_post_ra>
